<compile_context>
chip_gen: v7x
topology: tpu7x:2x2x1
jax: 0.10.0
libtpu: 0.0.40
codegen_flags: <defaults>
</compile_context>

<pallas_src>
import functools

import jax
import jax.numpy as jnp
from jax.experimental import pallas as pl
from jax.experimental.pallas import tpu as pltpu

_EPS = 1e-3  # BatchNorm2d eps used by the module


def _round_up(x, m):
    return (x + m - 1) // m * m


# --------------------------------------------------------------------------------------
# Kernel 1: link1 gate on pooled features.  All operands are tiny, whole-array VMEM refs.
# --------------------------------------------------------------------------------------
def _gate_kernel(p_ref, wl1_ref, s1_ref, b1_ref, wl2_ref, s2_ref, b2_ref,
                 s3_ref, b3_ref, o_ref):
    p = p_ref[...]                                                   # (Bp, c1) f32
    t = jnp.dot(p, wl1_ref[...], preferred_element_type=jnp.float32)  # Conv(c1, c1/4)
    t = t * s1_ref[...] + b1_ref[...]                                # BN
    t = t * jax.nn.sigmoid(t)                                        # SiLU
    u = jnp.dot(t, wl2_ref[...], preferred_element_type=jnp.float32)  # Conv(c1/4, c1)
    u = u * s2_ref[...] + b2_ref[...]                                # BN (act=False)
    s = jax.nn.sigmoid(u)                                            # nn.Sigmoid
    v = s * s3_ref[...] + b3_ref[...]                                # trailing BatchNorm2d
    o_ref[...] = (v * jax.nn.sigmoid(v)).astype(o_ref.dtype)         # SiLU


# --------------------------------------------------------------------------------------
# Kernel 2: fused cv1 (as im2col matmul) + BN + SiLU + gate + cv2 (1x1) + BN + SiLU.
# --------------------------------------------------------------------------------------
def _og1_main_kernel(patch_ref, w1_ref, s1_ref, b1_ref, gate_ref,
                     w2_ref, s2_ref, b2_ref, o_ref):
    x = patch_ref[0]                                                 # (tm, K1)
    y = jnp.dot(x, w1_ref[...], preferred_element_type=jnp.float32)  # 3x3/s2 conv (im2col)
    y = y * s1_ref[...] + b1_ref[...]                                # BN1 (folded)
    y = y * jax.nn.sigmoid(y)                                        # SiLU
    y = y * gate_ref[0]                                              # link1 gate, (1, c1) bcast
    z = jnp.dot(y.astype(w2_ref.dtype), w2_ref[...],
                preferred_element_type=jnp.float32)                  # cv2 1x1 conv
    z = z * s2_ref[...] + b2_ref[...]                                # BN2 (folded)
    z = z * jax.nn.sigmoid(z)                                        # SiLU
    o_ref[0] = z.astype(o_ref.dtype)


def _fold_bn(g, b, m, v):
    s = (g / jnp.sqrt(v + _EPS)).astype(jnp.float32)
    return s, (b - m * s).astype(jnp.float32)


@functools.partial(jax.jit, static_argnames=("tm", "use_bf16"))
def og1_forward(x0, x1, params, *, tm=512, use_bf16=False):
    """Og1 forward.  x0: [B, c1/2, H, W], x1: [B, c1, h1, w1] (NCHW). Returns [B, c1, H2, W2]."""
    B, c_half, H, W = x0.shape
    c1 = params["w1"].shape[0]
    c4 = params["wl1"].shape[0]
    H2 = (H + 2 - 3) // 2 + 1
    W2 = (W + 2 - 3) // 2 + 1

    # ---------------- link1 gate (tiny; pooling is a trivial reduction left to XLA) ---------
    pooled = jnp.mean(x1.astype(jnp.float32), axis=(2, 3))            # AdaptiveAvgPool2d((1,1))
    Bp = _round_up(B, 8)
    pooled_p = jnp.pad(pooled, ((0, Bp - B), (0, 0)))
    wl1m = jnp.transpose(params["wl1"].reshape(c4, c1), (1, 0)).astype(jnp.float32)  # [c1, c4]
    wl2m = jnp.transpose(params["wl2"].reshape(c1, c4), (1, 0)).astype(jnp.float32)  # [c4, c1]
    sl1, bl1 = _fold_bn(params["gl1"], params["bl1"], params["ml1"], params["vl1"])
    sl2, bl2 = _fold_bn(params["gl2"], params["bl2"], params["ml2"], params["vl2"])
    s3, b3 = _fold_bn(params["g3"], params["b3"], params["m3"], params["v3"])

    gate = pl.pallas_call(
        _gate_kernel,
        out_shape=jax.ShapeDtypeStruct((Bp, c1), jnp.float32),
        in_specs=[pl.BlockSpec(memory_space=pltpu.MemorySpace.VMEM)] * 9,
        out_specs=pl.BlockSpec(memory_space=pltpu.MemorySpace.VMEM),
    )(pooled_p, wl1m, sl1.reshape(1, c4), bl1.reshape(1, c4),
      wl2m, sl2.reshape(1, c1), bl2.reshape(1, c1),
      s3.reshape(1, c1), b3.reshape(1, c1))
    gate3 = gate[:B].reshape(B, 1, c1)

    # ---------------- im2col for the 3x3 stride-2 conv (channels-last rows) ------------------
    # Single NCHW->NHWC move (forced by the PyTorch layout), then strided slices only.
    x_nhwc = jnp.transpose(x0, (0, 2, 3, 1))                          # [B, H, W, c_half]
    xp = jnp.pad(x_nhwc, ((0, 0), (1, 1), (1, 1), (0, 0)))
    taps = [xp[:, di::2, dj::2, :][:, :H2, :W2, :]
            for di in range(3) for dj in range(3)]
    patches = jnp.concatenate(taps, axis=-1)                          # [B, H2, W2, 9*c_half]
    K1 = 9 * c_half
    M2 = H2 * W2
    patches = patches.reshape(B, M2, K1)

    # Row tile: as large as requested, clipped to the (8-aligned) row count; cdiv grid + pad.
    tm_eff = min(tm, _round_up(M2, 8))
    n_tiles = -(-M2 // tm_eff)
    M2p = n_tiles * tm_eff
    if M2p != M2:
        patches = jnp.pad(patches, ((0, 0), (0, M2p - M2), (0, 0)))

    # Matmul weights + folded BN affines.
    w1m = jnp.transpose(params["w1"], (2, 3, 1, 0)).reshape(K1, c1).astype(jnp.float32)
    w2m = jnp.transpose(params["w2"].reshape(c1, c1), (1, 0)).astype(jnp.float32)
    s1, b1 = _fold_bn(params["g1"], params["b1"], params["m1"], params["v1"])
    s2, b2 = _fold_bn(params["g2"], params["b2"], params["m2"], params["v2"])

    cdt = jnp.bfloat16 if use_bf16 else jnp.float32
    patches = patches.astype(cdt)
    w1m = w1m.astype(cdt)
    w2m = w2m.astype(cdt)
    out_dtype = x0.dtype

    flops = 2 * B * M2p * K1 * c1 + 2 * B * M2p * c1 * c1
    bytes_accessed = (B * M2p * K1 * jnp.dtype(cdt).itemsize
                      + B * M2p * c1 * jnp.dtype(out_dtype).itemsize
                      + (K1 * c1 + c1 * c1) * jnp.dtype(cdt).itemsize
                      + (B + 4) * c1 * 4)
    cost = pl.CostEstimate(flops=int(flops), transcendentals=int(2 * B * M2p * c1),
                           bytes_accessed=int(bytes_accessed))

    out = pl.pallas_call(
        _og1_main_kernel,
        out_shape=jax.ShapeDtypeStruct((B, M2p, c1), out_dtype),
        grid_spec=pltpu.PrefetchScalarGridSpec(
            num_scalar_prefetch=0,
            grid=(B, n_tiles),
            in_specs=[
                pl.BlockSpec((1, tm_eff, K1), lambda b, i: (b, i, 0)),   # activation patches
                pl.BlockSpec((K1, c1), lambda b, i: (0, 0)),             # W1
                pl.BlockSpec((1, c1), lambda b, i: (0, 0)),              # BN1 scale
                pl.BlockSpec((1, c1), lambda b, i: (0, 0)),              # BN1 shift
                pl.BlockSpec((1, 1, c1), lambda b, i: (b, 0, 0)),        # per-batch gate
                pl.BlockSpec((c1, c1), lambda b, i: (0, 0)),             # W2
                pl.BlockSpec((1, c1), lambda b, i: (0, 0)),              # BN2 scale
                pl.BlockSpec((1, c1), lambda b, i: (0, 0)),              # BN2 shift
            ],
            out_specs=pl.BlockSpec((1, tm_eff, c1), lambda b, i: (b, i, 0)),
        ),
        compiler_params=pltpu.CompilerParams(
            dimension_semantics=("parallel", "parallel")),
        cost_estimate=cost,
    )(patches, w1m, s1.reshape(1, c1), b1.reshape(1, c1), gate3,
      w2m, s2.reshape(1, c1), b2.reshape(1, c1))

    out = out[:, :M2, :].reshape(B, H2, W2, c1)
    return jnp.transpose(out, (0, 3, 1, 2))                           # back to NCHW


# --------------------------------------------------------------------------------------
# Pure-JAX reference (NCHW), mirrors the PyTorch module in eval mode.
# --------------------------------------------------------------------------------------
def _reference(x0, x1, p):
    def bn(y, g, b, m, v):
        s = g / jnp.sqrt(v + _EPS)
        return y * s.reshape(1, -1, 1, 1) + (b - m * s).reshape(1, -1, 1, 1)

    def silu(y):
        return y * jax.nn.sigmoid(y)

    conv = functools.partial(jax.lax.conv_general_dilated,
                             dimension_numbers=("NCHW", "OIHW", "NCHW"),
                             precision=jax.lax.Precision.HIGHEST)
    # cv1
    y = conv(x0, p["w1"], (2, 2), ((1, 1), (1, 1)))
    y = silu(bn(y, p["g1"], p["b1"], p["m1"], p["v1"]))
    # link1
    z = jnp.mean(x1, axis=(2, 3), keepdims=True)
    z = conv(z, p["wl1"], (1, 1), ((0, 0), (0, 0)))
    z = silu(bn(z, p["gl1"], p["bl1"], p["ml1"], p["vl1"]))
    z = conv(z, p["wl2"], (1, 1), ((0, 0), (0, 0)))
    z = bn(z, p["gl2"], p["bl2"], p["ml2"], p["vl2"])
    z = jax.nn.sigmoid(z)
    z = silu(bn(z, p["g3"], p["b3"], p["m3"], p["v3"]))
    # gate multiply + cv2
    y = y * z
    y = conv(y, p["w2"], (1, 1), ((0, 0), (0, 0)))
    return silu(bn(y, p["g2"], p["b2"], p["m2"], p["v2"]))


if __name__ == "__main__":
    key = jax.random.PRNGKey(0)
    keys = jax.random.split(key, 32)
    ki = iter(keys)

    B, c1, H, W = 2, 16, 16, 16
    c_half, c4 = c1 // 2, c1 // 4
    h1 = w1 = 8

    x0 = jax.random.normal(next(ki), (B, c_half, H, W), dtype=jnp.float32)
    x1 = jax.random.normal(next(ki), (B, c1, h1, w1), dtype=jnp.float32)

    def bn_params(n):
        return dict(
            g=0.5 + jax.random.uniform(next(ki), (n,), dtype=jnp.float32),
            b=0.1 * jax.random.normal(next(ki), (n,), dtype=jnp.float32),
            m=0.1 * jax.random.normal(next(ki), (n,), dtype=jnp.float32),
            v=0.5 + jax.random.uniform(next(ki), (n,), dtype=jnp.float32),
        )

    bn1, bnl1, bnl2, bn3, bn2 = (bn_params(c1), bn_params(c4), bn_params(c1),
                                 bn_params(c1), bn_params(c1))
    params = {
        "w1": 0.1 * jax.random.normal(next(ki), (c1, c_half, 3, 3), dtype=jnp.float32),
        "g1": bn1["g"], "b1": bn1["b"], "m1": bn1["m"], "v1": bn1["v"],
        "wl1": 0.1 * jax.random.normal(next(ki), (c4, c1, 1, 1), dtype=jnp.float32),
        "gl1": bnl1["g"], "bl1": bnl1["b"], "ml1": bnl1["m"], "vl1": bnl1["v"],
        "wl2": 0.1 * jax.random.normal(next(ki), (c1, c4, 1, 1), dtype=jnp.float32),
        "gl2": bnl2["g"], "bl2": bnl2["b"], "ml2": bnl2["m"], "vl2": bnl2["v"],
        "g3": bn3["g"], "b3": bn3["b"], "m3": bn3["m"], "v3": bn3["v"],
        "w2": 0.1 * jax.random.normal(next(ki), (c1, c1, 1, 1), dtype=jnp.float32),
        "g2": bn2["g"], "b2": bn2["b"], "m2": bn2["m"], "v2": bn2["v"],
    }

    out = og1_forward(x0, x1, params)
    out = jax.block_until_ready(out)

    ref = _reference(x0, x1, params)
    assert out.shape == (B, c1, H // 2, W // 2), out.shape
    assert jnp.allclose(out, ref, atol=2e-4, rtol=2e-4), float(jnp.max(jnp.abs(out - ref)))
    print("KERNEL_OK")
</pallas_src>

<mosaic_0001>
module attributes {stable_mosaic.version = 11 : i64} {
  func.func @_gate_kernel(%arg0: memref<8x16xf32, #tpu.memory_space<vmem>>, %arg1: memref<16x4xf32, #tpu.memory_space<vmem>>, %arg2: memref<1x4xf32, #tpu.memory_space<vmem>>, %arg3: memref<1x4xf32, #tpu.memory_space<vmem>>, %arg4: memref<4x16xf32, #tpu.memory_space<vmem>>, %arg5: memref<1x16xf32, #tpu.memory_space<vmem>>, %arg6: memref<1x16xf32, #tpu.memory_space<vmem>>, %arg7: memref<1x16xf32, #tpu.memory_space<vmem>>, %arg8: memref<1x16xf32, #tpu.memory_space<vmem>>, %arg9: memref<8x16xf32, #tpu.memory_space<vmem>>) attributes {dimension_semantics = [], scalar_prefetch = 0 : i64, scratch_operands = 0 : i64, tpu.core_type = #tpu.core_type<tc>} {
    %c0 = arith.constant 0 : index
    %c0_0 = arith.constant 0 : index
    %0 = vector.load %arg0[%c0, %c0_0] : memref<8x16xf32, #tpu.memory_space<vmem>>, vector<8x16xf32>
    %c0_1 = arith.constant 0 : index
    %c0_2 = arith.constant 0 : index
    %1 = vector.load %arg1[%c0_1, %c0_2] : memref<16x4xf32, #tpu.memory_space<vmem>>, vector<16x4xf32>
    %cst = arith.constant dense<0.000000e+00> : vector<8x4xf32>
    %2 = tpu.matmul %0, %1, %cst {dimension_numbers = #tpu.dot_dimension_numbers<[1], [0], [0], [1], [0, 0, 1, 1], [], []>} : vector<8x16xf32>, vector<16x4xf32>, vector<8x4xf32> -> vector<8x4xf32>
    %c0_3 = arith.constant 0 : index
    %c0_4 = arith.constant 0 : index
    %3 = vector.load %arg2[%c0_3, %c0_4] : memref<1x4xf32, #tpu.memory_space<vmem>>, vector<1x4xf32>
    %4 = vector.broadcast %3 : vector<1x4xf32> to vector<8x4xf32>
    %5 = arith.mulf %2, %4 : vector<8x4xf32>
    %c0_5 = arith.constant 0 : index
    %c0_6 = arith.constant 0 : index
    %6 = vector.load %arg3[%c0_5, %c0_6] : memref<1x4xf32, #tpu.memory_space<vmem>>, vector<1x4xf32>
    %7 = vector.broadcast %6 : vector<1x4xf32> to vector<8x4xf32>
    %8 = arith.addf %5, %7 : vector<8x4xf32>
    %9 = arith.negf %8 : vector<8x4xf32>
    %10 = math.exp %9 : vector<8x4xf32>
    %cst_7 = arith.constant 1.000000e+00 : f32
    %11 = vector.broadcast %cst_7 : f32 to vector<8x4xf32>
    %12 = arith.addf %11, %10 : vector<8x4xf32>
    %13 = arith.divf %11, %12 : vector<8x4xf32>
    %14 = arith.mulf %8, %13 : vector<8x4xf32>
    %c0_8 = arith.constant 0 : index
    %c0_9 = arith.constant 0 : index
    %15 = vector.load %arg4[%c0_8, %c0_9] : memref<4x16xf32, #tpu.memory_space<vmem>>, vector<4x16xf32>
    %cst_10 = arith.constant dense<0.000000e+00> : vector<8x16xf32>
    %16 = tpu.matmul %14, %15, %cst_10 {dimension_numbers = #tpu.dot_dimension_numbers<[1], [0], [0], [1], [0, 0, 1, 1], [], []>} : vector<8x4xf32>, vector<4x16xf32>, vector<8x16xf32> -> vector<8x16xf32>
    %c0_11 = arith.constant 0 : index
    %c0_12 = arith.constant 0 : index
    %17 = vector.load %arg5[%c0_11, %c0_12] : memref<1x16xf32, #tpu.memory_space<vmem>>, vector<1x16xf32>
    %18 = vector.broadcast %17 : vector<1x16xf32> to vector<8x16xf32>
    %19 = arith.mulf %16, %18 : vector<8x16xf32>
    %c0_13 = arith.constant 0 : index
    %c0_14 = arith.constant 0 : index
    %20 = vector.load %arg6[%c0_13, %c0_14] : memref<1x16xf32, #tpu.memory_space<vmem>>, vector<1x16xf32>
    %21 = vector.broadcast %20 : vector<1x16xf32> to vector<8x16xf32>
    %22 = arith.addf %19, %21 : vector<8x16xf32>
    %23 = arith.negf %22 : vector<8x16xf32>
    %24 = math.exp %23 : vector<8x16xf32>
    %cst_15 = arith.constant 1.000000e+00 : f32
    %25 = vector.broadcast %cst_15 : f32 to vector<8x16xf32>
    %26 = arith.addf %25, %24 : vector<8x16xf32>
    %27 = arith.divf %25, %26 : vector<8x16xf32>
    %c0_16 = arith.constant 0 : index
    %c0_17 = arith.constant 0 : index
    %28 = vector.load %arg7[%c0_16, %c0_17] : memref<1x16xf32, #tpu.memory_space<vmem>>, vector<1x16xf32>
    %29 = vector.broadcast %28 : vector<1x16xf32> to vector<8x16xf32>
    %30 = arith.mulf %27, %29 : vector<8x16xf32>
    %c0_18 = arith.constant 0 : index
    %c0_19 = arith.constant 0 : index
    %31 = vector.load %arg8[%c0_18, %c0_19] : memref<1x16xf32, #tpu.memory_space<vmem>>, vector<1x16xf32>
    %32 = vector.broadcast %31 : vector<1x16xf32> to vector<8x16xf32>
    %33 = arith.addf %30, %32 : vector<8x16xf32>
    %34 = arith.negf %33 : vector<8x16xf32>
    %35 = math.exp %34 : vector<8x16xf32>
    %cst_20 = arith.constant 1.000000e+00 : f32
    %36 = vector.broadcast %cst_20 : f32 to vector<8x16xf32>
    %37 = arith.addf %36, %35 : vector<8x16xf32>
    %38 = arith.divf %36, %37 : vector<8x16xf32>
    %39 = arith.mulf %33, %38 : vector<8x16xf32>
    %c0_21 = arith.constant 0 : index
    %c0_22 = arith.constant 0 : index
    %40 = vector.load %arg9[%c0_21, %c0_22] : memref<8x16xf32, #tpu.memory_space<vmem>>, vector<8x16xf32>
    tpu.vector_store %arg9[%c0_21, %c0_22], %39 {strides = array<i32>} : memref<8x16xf32, #tpu.memory_space<vmem>>, vector<8x16xf32>,
    return
  }
}

module attributes {stable_mosaic.version = 11 : i64} {
  func.func @_og1_main_kernel(%arg0: i32, %arg1: i32, %arg2: memref<1x64x72xf32, #tpu.memory_space<vmem>>, %arg3: memref<72x16xf32, #tpu.memory_space<vmem>>, %arg4: memref<1x16xf32, #tpu.memory_space<vmem>>, %arg5: memref<1x16xf32, #tpu.memory_space<vmem>>, %arg6: memref<1x1x16xf32, #tpu.memory_space<vmem>>, %arg7: memref<16x16xf32, #tpu.memory_space<vmem>>, %arg8: memref<1x16xf32, #tpu.memory_space<vmem>>, %arg9: memref<1x16xf32, #tpu.memory_space<vmem>>, %arg10: memref<1x64x16xf32, #tpu.memory_space<vmem>>) attributes {dimension_semantics = [#tpu.dimension_semantics<parallel>, #tpu.dimension_semantics<parallel>], iteration_bounds = array<i64: 2, 1>, scalar_prefetch = 0 : i64, scratch_operands = 0 : i64, tpu.core_type = #tpu.core_type<tc>, window_params = [{transform_indices = @transform_0, window_bounds = array<i64: 1, 64, 72>}, {pipeline_mode = #tpu.pipeline_mode<synchronous>, transform_indices = @transform_1, window_bounds = array<i64: 72, 16>}, {pipeline_mode = #tpu.pipeline_mode<synchronous>, transform_indices = @transform_2, window_bounds = array<i64: 1, 16>}, {pipeline_mode = #tpu.pipeline_mode<synchronous>, transform_indices = @transform_3, window_bounds = array<i64: 1, 16>}, {transform_indices = @transform_4, window_bounds = array<i64: 1, 1, 16>}, {pipeline_mode = #tpu.pipeline_mode<synchronous>, transform_indices = @transform_5, window_bounds = array<i64: 16, 16>}, {pipeline_mode = #tpu.pipeline_mode<synchronous>, transform_indices = @transform_6, window_bounds = array<i64: 1, 16>}, {pipeline_mode = #tpu.pipeline_mode<synchronous>, transform_indices = @transform_7, window_bounds = array<i64: 1, 16>}, {transform_indices = @transform_8, window_bounds = array<i64: 1, 64, 16>}]} {
    %c0 = arith.constant 0 : index
    %c0_0 = arith.constant 0 : index
    %c0_1 = arith.constant 0 : index
    %0 = vector.load %arg2[%c0, %c0_0, %c0_1] : memref<1x64x72xf32, #tpu.memory_space<vmem>>, vector<1x64x72xf32>
    %1 = vector.shape_cast %0 : vector<1x64x72xf32> to vector<64x72xf32>
    %c0_2 = arith.constant 0 : index
    %c0_3 = arith.constant 0 : index
    %2 = vector.load %arg3[%c0_2, %c0_3] : memref<72x16xf32, #tpu.memory_space<vmem>>, vector<72x16xf32>
    %cst = arith.constant dense<0.000000e+00> : vector<64x16xf32>
    %3 = tpu.matmul %1, %2, %cst {dimension_numbers = #tpu.dot_dimension_numbers<[1], [0], [0], [1], [0, 0, 1, 1], [], []>} : vector<64x72xf32>, vector<72x16xf32>, vector<64x16xf32> -> vector<64x16xf32>
    %c0_4 = arith.constant 0 : index
    %c0_5 = arith.constant 0 : index
    %4 = vector.load %arg4[%c0_4, %c0_5] : memref<1x16xf32, #tpu.memory_space<vmem>>, vector<1x16xf32>
    %5 = vector.broadcast %4 : vector<1x16xf32> to vector<64x16xf32>
    %6 = arith.mulf %3, %5 : vector<64x16xf32>
    %c0_6 = arith.constant 0 : index
    %c0_7 = arith.constant 0 : index
    %7 = vector.load %arg5[%c0_6, %c0_7] : memref<1x16xf32, #tpu.memory_space<vmem>>, vector<1x16xf32>
    %8 = vector.broadcast %7 : vector<1x16xf32> to vector<64x16xf32>
    %9 = arith.addf %6, %8 : vector<64x16xf32>
    %10 = arith.negf %9 : vector<64x16xf32>
    %11 = math.exp %10 : vector<64x16xf32>
    %cst_8 = arith.constant 1.000000e+00 : f32
    %12 = vector.broadcast %cst_8 : f32 to vector<64x16xf32>
    %13 = arith.addf %12, %11 : vector<64x16xf32>
    %14 = arith.divf %12, %13 : vector<64x16xf32>
    %15 = arith.mulf %9, %14 : vector<64x16xf32>
    %c0_9 = arith.constant 0 : index
    %c0_10 = arith.constant 0 : index
    %c0_11 = arith.constant 0 : index
    %16 = vector.load %arg6[%c0_9, %c0_10, %c0_11] : memref<1x1x16xf32, #tpu.memory_space<vmem>>, vector<1x1x16xf32>
    %17 = vector.shape_cast %16 : vector<1x1x16xf32> to vector<1x16xf32>
    %18 = vector.broadcast %17 : vector<1x16xf32> to vector<64x16xf32>
    %19 = arith.mulf %15, %18 : vector<64x16xf32>
    %c0_12 = arith.constant 0 : index
    %c0_13 = arith.constant 0 : index
    %20 = vector.load %arg7[%c0_12, %c0_13] : memref<16x16xf32, #tpu.memory_space<vmem>>, vector<16x16xf32>
    %cst_14 = arith.constant dense<0.000000e+00> : vector<64x16xf32>
    %21 = tpu.matmul %19, %20, %cst_14 {dimension_numbers = #tpu.dot_dimension_numbers<[1], [0], [0], [1], [0, 0, 1, 1], [], []>} : vector<64x16xf32>, vector<16x16xf32>, vector<64x16xf32> -> vector<64x16xf32>
    %c0_15 = arith.constant 0 : index
    %c0_16 = arith.constant 0 : index
    %22 = vector.load %arg8[%c0_15, %c0_16] : memref<1x16xf32, #tpu.memory_space<vmem>>, vector<1x16xf32>
    %23 = vector.broadcast %22 : vector<1x16xf32> to vector<64x16xf32>
    %24 = arith.mulf %21, %23 : vector<64x16xf32>
    %c0_17 = arith.constant 0 : index
    %c0_18 = arith.constant 0 : index
    %25 = vector.load %arg9[%c0_17, %c0_18] : memref<1x16xf32, #tpu.memory_space<vmem>>, vector<1x16xf32>
    %26 = vector.broadcast %25 : vector<1x16xf32> to vector<64x16xf32>
    %27 = arith.addf %24, %26 : vector<64x16xf32>
    %28 = arith.negf %27 : vector<64x16xf32>
    %29 = math.exp %28 : vector<64x16xf32>
    %cst_19 = arith.constant 1.000000e+00 : f32
    %30 = vector.broadcast %cst_19 : f32 to vector<64x16xf32>
    %31 = arith.addf %30, %29 : vector<64x16xf32>
    %32 = arith.divf %30, %31 : vector<64x16xf32>
    %33 = arith.mulf %27, %32 : vector<64x16xf32>
    %c0_20 = arith.constant 0 : index
    %c0_21 = arith.constant 0 : index
    %c0_22 = arith.constant 0 : index
    %34 = vector.load %arg10[%c0_20, %c0_21, %c0_22] : memref<1x64x16xf32, #tpu.memory_space<vmem>>, vector<1x64x16xf32>
    %35 = vector.shape_cast %34 : vector<1x64x16xf32> to vector<64x16xf32>
    %36 = vector.shape_cast %33 : vector<64x16xf32> to vector<1x64x16xf32>
    tpu.vector_store %arg10[%c0_20, %c0_21, %c0_22], %36 {strides = array<i32>} : memref<1x64x16xf32, #tpu.memory_space<vmem>>, vector<1x64x16xf32>,
    return
  }
  func.func @transform_0(%arg0: i32, %arg1: i32) -> (i32, i32, i32) {
    %c0_i32 = arith.constant 0 : i32
    %c0_i32_0 = arith.constant 0 : i32
    return %arg0, %arg1, %c0_i32 : i32, i32, i32
  }
  func.func @transform_1(%arg0: i32, %arg1: i32) -> (i32, i32) {
    %c0_i32 = arith.constant 0 : i32
    %c0_i32_0 = arith.constant 0 : i32
    %c0_i32_1 = arith.constant 0 : i32
    return %c0_i32, %c0_i32_0 : i32, i32
  }
  func.func @transform_2(%arg0: i32, %arg1: i32) -> (i32, i32) {
    %c0_i32 = arith.constant 0 : i32
    %c0_i32_0 = arith.constant 0 : i32
    %c0_i32_1 = arith.constant 0 : i32
    return %c0_i32, %c0_i32_0 : i32, i32
  }
  func.func @transform_3(%arg0: i32, %arg1: i32) -> (i32, i32) {
    %c0_i32 = arith.constant 0 : i32
    %c0_i32_0 = arith.constant 0 : i32
    %c0_i32_1 = arith.constant 0 : i32
    return %c0_i32, %c0_i32_0 : i32, i32
  }
  func.func @transform_4(%arg0: i32, %arg1: i32) -> (i32, i32, i32) {
    %c0_i32 = arith.constant 0 : i32
    %c0_i32_0 = arith.constant 0 : i32
    %c0_i32_1 = arith.constant 0 : i32
    return %arg0, %c0_i32, %c0_i32_0 : i32, i32, i32
  }
  func.func @transform_5(%arg0: i32, %arg1: i32) -> (i32, i32) {
    %c0_i32 = arith.constant 0 : i32
    %c0_i32_0 = arith.constant 0 : i32
    %c0_i32_1 = arith.constant 0 : i32
    return %c0_i32, %c0_i32_0 : i32, i32
  }
  func.func @transform_6(%arg0: i32, %arg1: i32) -> (i32, i32) {
    %c0_i32 = arith.constant 0 : i32
    %c0_i32_0 = arith.constant 0 : i32
    %c0_i32_1 = arith.constant 0 : i32
    return %c0_i32, %c0_i32_0 : i32, i32
  }
  func.func @transform_7(%arg0: i32, %arg1: i32) -> (i32, i32) {
    %c0_i32 = arith.constant 0 : i32
    %c0_i32_0 = arith.constant 0 : i32
    %c0_i32_1 = arith.constant 0 : i32
    return %c0_i32, %c0_i32_0 : i32, i32
  }
  func.func @transform_8(%arg0: i32, %arg1: i32) -> (i32, i32, i32) {
    %c0_i32 = arith.constant 0 : i32
    %c0_i32_0 = arith.constant 0 : i32
    return %arg0, %arg1, %c0_i32 : i32, i32, i32
  }
}

</mosaic_0001>

<bundles_post_ra>
// kernel: og1_forward.2
= control target key start
LH: loop header
LB: loop body
LE: loop exit
PB: predicated region body
PF: predicated region fallthrough
CT: control target
= control target key end

     0   :  { %v308_v0 = vmov 0.0|0.0   ;;  %vm309_vm0 = vmmov 0   ;;  %v310_v3 = vmov 0.0   ;;  %vm35_vm1 = vcmask 130048   ;;  %s396_s1 = inlined_call_operand.vmem [shape: f32[16,4], index: 1, kind: input, shape index: {}]   ;;  %s397_s0 = inlined_call_operand.vmem [shape: f32[8,16], index: 0, kind: input, shape index: {}]   ;;  %s398_s4 = inlined_call_operand.vmem [shape: f32[4,16], index: 4, kind: input, shape index: {}]   ;;  %s399_s2 = inlined_call_operand.vmem [shape: f32[1,4], index: 2, kind: input, shape index: {}]   ;;  %s400_s3 = inlined_call_operand.vmem [shape: f32[1,4], index: 3, kind: input, shape index: {}]   ;;  %s401_s5 = inlined_call_operand.vmem [shape: f32[1,16], index: 5, kind: input, shape index: {}]   ;;  %s402_s6 = inlined_call_operand.vmem [shape: f32[1,16], index: 6, kind: input, shape index: {}]   ;;  %s403_s7 = inlined_call_operand.vmem [shape: f32[1,16], index: 7, kind: input, shape index: {}]   ;;  %s404_s8 = inlined_call_operand.vmem [shape: f32[1,16], index: 8, kind: input, shape index: {}]   ;;  %s405_s9 = inlined_call_operand.vmem [shape: f32[8,16], index: 9, kind: output, shape index: {}]  }
   0x1   :  { %290 = vmatprep.subr.bf16.mxu0 %v308_v0  ;;  %v33_v1 = vld [vmem:[%s396_s1] sm:$0xff]  ;;  %v34_v2 = vld [vmem:[%s396_s1 + $0x8] sm:$0xff]  ;;  %282 = vmatprep.mubr.msk.f32.mxu0 %vm309_vm0, %v310_v3  ;;  %vm137_vm2 = vcmask 1043456   ;;  %vm133_vm3 = vcmask 31744  }
   0x2   :  { %v291_v4 = vpack.c.bf16 %v34_v2, %v33_v1  ;;  %285 = vmatprep.subr.mxu1 %v310_v3  ;;  %287 = vmatprep.mubr.msk.f32.mxu1 %vm309_vm0, %v310_v3  ;;  %v32_v5 = vld [vmem:[%s397_s0] sm:$0xff] }
   0x3   :  { %v132_v6 = vld [vmem:[%s398_s4] sm:$0xf] }
   0x4   :  { %292 = vmatpush3.bf16.msra.mxu0 %v291_v4  ;;  %286 = vmatpush3.msk.msra.mxu1 %vm137_vm2, %v132_v6  ;;  %v262_v7 = vld [vmem:[%s399_s2] ss:$0 sm:$0xff] }
   0x5   :  { %v263_v9 = vld [vmem:[%s400_s3] ss:$0 sm:$0xff] }
   0x6   :  { %v267_v18 = vld [vmem:[%s401_s5] ss:$0 sm:$0xff] }
   0x7   :  { %283 = vmatmul.mubr.msk.f32.vlgmr.msra.gmra.mrb[0].mxu0 %vm35_vm1, %v32_v5  ;;  %v268_v20 = vld [vmem:[%s402_s6] ss:$0 sm:$0xff] }
   0x8   :  { %v270_v27 = vld [vmem:[%s403_s7] ss:$0 sm:$0xff] }
   0x9   :  { %v271_v29 = vld [vmem:[%s404_s8] ss:$0 sm:$0xff] }
  0xda   :  { %v105_v8 = vpop.f32.mrb[0].mxu0 }
  0xdb   :  { %v116_v10 = vmul.f32 %v262_v7, %v105_v8  ;;  %v284_v11 = vpop.f32.mrb[1].mxu0 }
  0xdd   :  { %v124_v12 = vadd.f32 %v263_v9, %v116_v10 }
  0xdf   :  { %v264_v13 = vmul.f32 -1.442695, %v124_v12 }
  0xe1   :  { %296 = vpow2.f32 %v264_v13 }
  0xeb   :  { %v297_v14 = vpop.eup %296 }
  0xec   :  { %v128_v15 = vadd.f32 1.0, %v297_v14 }
  0xee   :  { %298 = vrcp.f32 %v128_v15 }
  0xf8   :  { %v299_v16 = vpop.eup %298 }
  0xf9   :  { %v131_v17 = vmul.f32 %v299_v16, %v124_v12 }
  0xfb   :  { %288 = vmatmul.mubr.msk.f32.vlgmr.msra.gmra.mrb[0].mxu1 %vm133_vm3, %v131_v17 }
 0x1ce   :  { %v207_v19 = vpop.f32.mrb[0].mxu1 }
 0x1cf   :  { %v218_v21 = vmul.f32 %v267_v18, %v207_v19  ;;  %v289_v22 = vpop.f32.mrb[1].mxu1 }
 0x1d1   :  { %v226_v23 = vadd.f32 %v268_v20, %v218_v21 }
 0x1d3   :  { %v269_v24 = vmul.f32 -1.442695, %v226_v23 }
 0x1d5   :  { %300 = vpow2.f32 %v269_v24 }
 0x1df   :  { %v301_v25 = vpop.eup %300 }
 0x1e0   :  { %v230_v26 = vadd.f32 1.0, %v301_v25 }
 0x1e2   :  { %302 = vrcp.f32 %v230_v26 }
 0x1ec   :  { %v303_v28 = vpop.eup %302 }
 0x1ed   :  { %v240_v30 = vmul.f32 %v303_v28, %v270_v27 }
 0x1ef   :  { %v248_v31 = vadd.f32 %v271_v29, %v240_v30 }
 0x1f1   :  { %v272_v32 = vmul.f32 -1.442695, %v248_v31 }
 0x1f3   :  { %304 = vpow2.f32 %v272_v32 }
 0x1fd   :  { %v305_v33 = vpop.eup %304 }
 0x1fe   :  { %v252_v34 = vadd.f32 1.0, %v305_v33 }
 0x200   :  { %306 = vrcp.f32 %v252_v34 }
 0x20a   :  { %v307_v35 = vpop.eup %306 }
 0x20b   :  { %v255_v36 = vmul.f32 %v307_v35, %v248_v31 }
 0x20d   :  { %256 = vst.msk [vmem:[%s405_s9] sm:$0xff] %vm35_vm1, %v255_v36 }

// kernel: og1_forward.3
= control target key start
LH: loop header
LB: loop body
LE: loop exit
PB: predicated region body
PF: predicated region fallthrough
CT: control target
= control target key end

     0   :  { %13 = vsyncpa [#allocation3], 0  ;;  %s1516_s0 = inlined_call_operand.vmem [shape: f32[2,64,72], index: 0, kind: input, shape index: {}]   ;;  %s1517_s1 = inlined_call_operand.vmem [shape: f32[72,16], index: 1, kind: input, shape index: {}]   ;;  %s1518_s2 = inlined_call_operand.vmem [shape: f32[1,16], index: 2, kind: input, shape index: {}]   ;;  %s1519_s3 = inlined_call_operand.vmem [shape: f32[1,16], index: 3, kind: input, shape index: {}]   ;;  %s1520_s4 = inlined_call_operand.vmem [shape: f32[2,1,16], index: 4, kind: input, shape index: {}]   ;;  %s1521_s5 = inlined_call_operand.vmem [shape: f32[16,16], index: 5, kind: input, shape index: {}]   ;;  %s1522_s6 = inlined_call_operand.vmem [shape: f32[1,16], index: 6, kind: input, shape index: {}]   ;;  %s1523_s7 = inlined_call_operand.vmem [shape: f32[1,16], index: 7, kind: input, shape index: {}]   ;;  %s1524_s8 = inlined_call_operand.hbm [shape: f32[2,64,16], index: 8, kind: output, shape index: {}]  }
   0x1   :  { %15 = vsyncpa [#allocation3 + $0x1], 0  ;;  %s1321_s27 = smov 0   ;;  %s1323_s28 = smov 0  }
   0x2   :  { %s1325_s29 = smov 0   ;;  %s1327_s30 = smov 0  }
   0x3   :  { %s1329_s9 = smov 0   ;;  %s1331_s10 = smov 0  }
   0x4 LB: > { %s927_s11 = sadd.s32 4294967295, %s1271_s10   ;;  %s928_s12 = sadd.s32 4294967294, %s1271_s10   ;;  %s1271_s10 = sphi %s1331_s10, %s21_s10   ;;  %s1267_s9 = sphi %s1329_s9, %s1531_s9   ;;  %s1263_s30 = sphi %s1327_s30, %s1530_s30   ;;  %s1259_s29 = sphi %s1325_s29, %s1529_s29   ;;  %s1255_s28 = sphi %s1323_s28, %s1528_s28   ;;  %s1251_s27 = sphi %s1321_s27, %s1527_s27  }
   0x5   : > { %s33_s13 = sadd.s32 1, %s1267_s9  ;;  %s222_s14 = sadd.s32 1, %s1259_s29 }
   0x6   : > { %p35_p0 = scmp.ge.s32.totalorder %s33_s13, 2  ;;  %p232_p1 = scmp.ne.s32.totalorder %s1259_s29, %s1255_s28 }
   0x7   : > { %p233_p2 = scmp.eq.s32.totalorder %s927_s11, 1  ;;  %p238_p3 = scmp.ne.s32.totalorder %s1255_s28, %s1251_s27 }
   0x8   : > { %s1533_s13 = smov (%p35_p0, %s33_s13), 0  ;;  %p239_p5 = scmp.eq.s32.totalorder %s928_s12, 1 }
   0x9   : > { %p1361_p4 = por %p233_p2, %p232_p1  ;;  %s217_s16 = ssub.s32 %s1267_s9, %s1533_s13 }
   0xa   : > { %p931_p6 = scmp.ge.s32.totalorder %s1271_s10, 1  ;;  %p220_p7 = scmp.eq.s32.totalorder %s217_s16, 0 }
   0xb   : > { %p1368_p8 = por %p239_p5, %p238_p3  ;;  %p294_p9 = scmp.lt.s32.totalorder %s1271_s10, 3 }
   0xc   : > { %s1374_s18 = scalar_select %p220_p7, %s1259_s29, %s222_s14  }
   0xd   : > { %p295_p10 = pnand %p931_p6, %p294_p9 }
   0xe   : > { %v357_v0 = vld [vmem:[%s1517_s1] sm:$0xff] (!%p295_p10)  ;;  %v358_v1 = vld [vmem:[%s1517_s1 + $0x8] sm:$0xff] (!%p295_p10)  ;;  %v359_v2 = vld [vmem:[%s1517_s1 + $0x10] sm:$0xff] (!%p295_p10)  ;;  %p336_p11 = scmp.lt.s32.totalorder (!%p295_p10), %s1263_s30, 1  ;;  %vm366_vm0 = vcmask (!%p295_p10), 588800   ;;  %vm599_vm1 = vcmask (!%p295_p10), 130048  }
   0xf   : > { %298 = sbr.rel (%p295_p10) target bundleno = 558 (0x22e), region = 52  ;;  %v1052_v3 = vpack.c.bf16 (!%p295_p10), %v358_v1, %v357_v0  ;;  %v360_v4 = vld [vmem:[%s1517_s1 + $0x18] sm:$0xff] (!%p295_p10)  ;;  %v361_v6 = vld [vmem:[%s1517_s1 + $0x20] sm:$0xff] (!%p295_p10)  ;;  %v362_v7 = vld [vmem:[%s1517_s1 + $0x28] sm:$0xff] (!%p295_p10)  ;;  %s332_s22 = sand.u32 (!%p295_p10), 1, %s1255_s28  }
  0x10   : > { %v1056_v5 = vpack.c.bf16 (!%p295_p10), %v360_v4, %v359_v2  ;;  %v1060_v8 = vpack.c.bf16 (!%p295_p10), %v362_v7, %v361_v6  ;;  %v363_v9 = vld [vmem:[%s1517_s1 + $0x30] sm:$0xff] (!%p295_p10)  ;;  %v364_v10 = vld [vmem:[%s1517_s1 + $0x38] sm:$0xff] (!%p295_p10)  ;;  %v365_v13 = vld [vmem:[%s1517_s1 + $0x40] sm:$0xff] (!%p295_p10)  ;;  %s932_s24 = sshll.u32 (!%p295_p10), %s332_s22, 6  ;;  %s978_s26 = sshll.u32 (!%p295_p10), %s1263_s30, 10 }
  0x11   : > { %1053 = vmatprep.subr.bf16.mxu0 (!%p295_p10), %v1052_v3  ;;  %v1064_v12 = vpack.c.bf16 (!%p295_p10), %v364_v10, %v363_v9  ;;  %v597_v21 = vld [vmem:[%s1521_s5] sm:$0xff] (!%p295_p10)  ;;  %v598_v22 = vld [vmem:[%s1521_s5 + $0x8] sm:$0xff] (!%p295_p10)  ;;  %s334_s25 = scalar_lea.vmem (!%p295_p10), [#allocation2], %s932_s24  ;;  %s1273_s16 = smov (!%p295_p10), [#allocation2]  }
  0x12   : > { %1055 = vmatpush3.bf16.msra.mxu0 (!%p295_p10), %v1052_v3  ;;  %v1068_v23 = vpack.c.bf16 (!%p295_p10), %v598_v22, %v597_v21  ;;  %v943_v24 = vld [vmem:[%s1518_s2] ss:$0 sm:$0xff] (!%p295_p10) }
  0x13   : > { %1057 = vmatprep.subr.bf16.mxu0 (!%p295_p10), %v1056_v5  ;;  %v944_v26 = vld [vmem:[%s1519_s3] ss:$0 sm:$0xff] (!%p295_p10) }
  0x14   : > { %1069 = vmatprep.subr.bf16.mxu1 (!%p295_p10), %v1068_v23 }
  0x15   : > { %1071 = vmatpush3.bf16.msra.mxu1 (!%p295_p10), %v1068_v23 }
  0x16   : > { %s1396_s19 = scalar_select %p336_p11, %s1263_s30, 1  ;;  %1059 = vmatpush3.bf16.msra.mxu0 %v1056_v5 }
  0x17   : > { %1061 = vmatprep.subr.bf16.mxu0 %v1060_v8  ;;  %s1470_s30 = scalar_lea.sflag [#allocation3], %s332_s22 }
  0x18   : > { %s977_s20 = sshll.u32 %s1396_s19, 6  ;;  %s347_s14 = scalar_lea.vmem %s1520_s4, %s1396_s19 }
  0x19   : > { %s343_s23 = scalar_lea.vmem %s1516_s0, %s977_s20  ;;  %s1197_s20 = sshll.u32 %s1273_s16, 4  ;;  %s1198_s20 = int_to_ptr.vmem [resolvable:$false] %s1197_s20 }
  0x1a   : > { %v349_v11 = vld [vmem:[%s343_s23] sm:$0xff]  ;;  %1063 = vmatpush3.bf16.msra.mxu0 %v1060_v8  ;;  %v350_v14 = vld [vmem:[%s343_s23 + $0x8] sm:$0xff]  ;;  %v351_v15 = vld [vmem:[%s343_s23 + $0x10] sm:$0xff]  ;;  %s1199_s21 = scalar_lea.vmem %s1198_s20, 2048 }
  0x1b   : > { %1024 = vmatprep.mubr.msk.f32.mxu0 %vm366_vm0, %v349_v11  ;;  %1065 = vmatprep.subr.bf16.mxu0 %v1064_v12  ;;  %v352_v16 = vld [vmem:[%s343_s23 + $0x18] sm:$0xff]  ;;  %v353_v17 = vld [vmem:[%s343_s23 + $0x20] sm:$0xff]  ;;  %v354_v18 = vld [vmem:[%s343_s23 + $0x28] sm:$0xff] }
  0x1c   : > { %v355_v19 = vld [vmem:[%s343_s23 + $0x30] sm:$0xff]  ;;  %v356_v20 = vld [vmem:[%s343_s23 + $0x38] sm:$0xff]  ;;  %v953_v8 = vld [vmem:[%s347_s14] ss:$0 sm:$0xff]  ;;  %s839_s23 = sshll.u32 %s334_s25, 4  ;;  %s1462_s14 = scalar_lea.hbm %s1524_s8, %s978_s26  ;;  %s1464_s23 = int_to_ptr.vmem [resolvable:$true] %s839_s23 }
  0x1d   : > { %s1193_s19 = scalar_lea.vmem %s1464_s23, 1024  ;;  %p1200_p1 = scmp.lt.s32.totalorder %s1464_s23, %s1198_s20 }
  0x1e   : > { %1067 = vmatpush3.bf16.msra.mxu0 %v1064_v12  ;;  %p1194_p12 = scmp.ne.s32.totalorder %s1464_s23, %s1193_s19  ;;  %p1201_p2 = scmp.lt.s32.totalorder %s1199_s21, %s1193_s19 }
  0x1f   : > { %1022 = vmatprep.subr.mxu0 %v365_v13 }
  0x20   : > { %p1195_p13 = pnand %p1194_p12, %p1361_p4  ;;  %p1202_p3 = por %p1201_p2, %p1200_p1 }
  0x22   : > { %1023 = vmatpush3.msra.mxu0 %v365_v13  ;;  %p1196_p0 = pneg %p1195_p13 }
  0x23   : > { %1025 = vmatmul.mubr.msk.f32.vlgmr.msra.gmra.mrb[0].mxu0 %vm366_vm0, %v350_v14 }
  0x24   : > { %1027 = vmatprep.mubr.msk.f32.mxu0 %vm366_vm0, %v351_v15  ;;  %p1203_p5 = pnand %p1202_p3, %p1196_p0 }
  0x27   : > { %1028 = vmatmul.mubr.msk.f32.gmra.mrb[2].mxu0 %vm366_vm0, %v352_v16 }
  0x28   : > { %1030 = vmatprep.mubr.msk.f32.mxu0 %vm366_vm0, %v353_v17 }
  0x2b   : > { %1031 = vmatmul.mubr.msk.f32.gmra.mrb[4].mxu0 %vm366_vm0, %v354_v18 }
  0x2c   : > { %1033 = vmatprep.mubr.msk.f32.mxu0 %vm366_vm0, %v355_v19 }
  0x2f   : > { %1034 = vmatmul.mubr.msk.f32.gmra.mrb[6].mxu0 %vm366_vm0, %v356_v20 }
  0xf6   : > { %v1026_v25 = vpop.f32.mrb[0].mxu0 }
  0xf7   : > { %v504_v27 = vmul.f32 %v1026_v25, %v943_v24  ;;  %v457_v28 = vpop.f32.mrb[1].mxu0 }
  0xf8   : > { %v503_v29 = vmul.f32 %v943_v24, %v457_v28 }
  0xf9   : > { %v519_v30 = vadd.f32 %v944_v26, %v504_v27 }
  0xfa   : > { %v518_v31 = vadd.f32 %v944_v26, %v503_v29  ;;  %v1029_v32 = vpop.f32.mrb[2].mxu0 }
  0xfb   : > { %v946_v33 = vmul.f32 -1.442695, %v519_v30  ;;  %v506_v34 = vmul.f32 %v1029_v32, %v943_v24  ;;  %v467_v35 = vpop.f32.mrb[3].mxu0 }
  0xfc   : > { %v945_v36 = vmul.f32 -1.442695, %v518_v31  ;;  %v505_v37 = vmul.f32 %v943_v24, %v467_v35  ;;  %v962_v35 = vld [vmem:[%s1522_s6] ss:$0 sm:$0xff] }
  0xfd   : > { %1129 = vpow2.f32 %v946_v33  ;;  %v521_v38 = vadd.f32 %v944_v26, %v506_v34 }
  0xfe   : > { %1131 = vpow2.f32 %v945_v36  ;;  %v520_v39 = vadd.f32 %v944_v26, %v505_v37  ;;  %v1032_v40 = vpop.f32.mrb[4].mxu0  ;;  %v963_v37 = vld [vmem:[%s1523_s7] ss:$0 sm:$0xff] }
  0xff   : > { %v948_v41 = vmul.f32 -1.442695, %v521_v38  ;;  %v508_v42 = vmul.f32 %v1032_v40, %v943_v24  ;;  %v477_v43 = vpop.f32.mrb[5].mxu0 }
 0x100   : > { %v947_v44 = vmul.f32 -1.442695, %v520_v39  ;;  %v507_v45 = vmul.f32 %v943_v24, %v477_v43 }
 0x101   : > { %1133 = vpow2.f32 %v948_v41  ;;  %v523_v46 = vadd.f32 %v944_v26, %v508_v42 }
 0x102   : > { %1135 = vpow2.f32 %v947_v44  ;;  %v522_v47 = vadd.f32 %v944_v26, %v507_v45  ;;  %v1035_v48 = vpop.f32.mrb[6].mxu0 }
 0x103   : > { %v950_v49 = vmul.f32 -1.442695, %v523_v46  ;;  %v510_v50 = vmul.f32 %v1035_v48, %v943_v24  ;;  %v487_v51 = vpop.f32.mrb[7].mxu0 }
 0x104   : > { %v949_v52 = vmul.f32 -1.442695, %v522_v47  ;;  %v509_v53 = vmul.f32 %v943_v24, %v487_v51 }
 0x105   : > { %1137 = vpow2.f32 %v950_v49  ;;  %v525_v54 = vadd.f32 %v944_v26, %v510_v50 }
 0x106   : > { %1139 = vpow2.f32 %v949_v52  ;;  %v524_v55 = vadd.f32 %v944_v26, %v509_v53 }
 0x107   : > { %v1130_v56 = vpop.eup %1129  ;;  %v952_v57 = vmul.f32 -1.442695, %v525_v54 }
 0x108   : > { %v1132_v58 = vpop.eup %1131  ;;  %v551_v59 = vadd.f32 1.0, %v1130_v56  ;;  %v951_v60 = vmul.f32 -1.442695, %v524_v55 }
 0x109   : > { %v550_v61 = vadd.f32 1.0, %v1132_v58  ;;  %1141 = vpow2.f32 %v952_v57 }
 0x10a   : > { %1143 = vrcp.f32 %v551_v59 }
 0x10b   : > { %v1134_v62 = vpop.eup %1133  ;;  %1145 = vrcp.f32 %v550_v61 }
 0x10c   : > { %v1136_v63 = vpop.eup %1135  ;;  %v553_v0 = vadd.f32 1.0, %v1134_v62  ;;  %1147 = vpow2.f32 %v951_v60 }
 0x10d   : > { %v552_v1 = vadd.f32 1.0, %v1136_v63 }
 0x10e   : > { %1149 = vrcp.f32 %v553_v0 }
 0x10f   : > { %v1138_v2 = vpop.eup %1137  ;;  %1151 = vrcp.f32 %v552_v1 }
 0x110   : > { %v1140_v3 = vpop.eup %1139  ;;  %v555_v4 = vadd.f32 1.0, %v1138_v2 }
 0x111   : > { %v554_v5 = vadd.f32 1.0, %v1140_v3 }
 0x112   : > { %1153 = vrcp.f32 %v555_v4 }
 0x113   : > { %v1142_v6 = vpop.eup %1141  ;;  %1155 = vrcp.f32 %v554_v5 }
 0x114   : > { %v1144_v7 = vpop.eup %1143  ;;  %v557_v9 = vadd.f32 1.0, %v1142_v6 }
 0x115   : > { %v1146_v10 = vpop.eup %1145  ;;  %v575_v11 = vmul.f32 %v1144_v7, %v519_v30 }
 0x116   : > { %v1148_v12 = vpop.eup %1147  ;;  %1157 = vrcp.f32 %v557_v9  ;;  %v574_v13 = vmul.f32 %v1146_v10, %v518_v31 }
 0x117   : > { %v590_v14 = vmul.f32 %v953_v8, %v575_v11  ;;  %v556_v15 = vadd.f32 1.0, %v1148_v12 }
 0x118   : > { %v1150_v16 = vpop.eup %1149  ;;  %v589_v17 = vmul.f32 %v953_v8, %v574_v13 }
 0x119   : > { %v1152_v18 = vpop.eup %1151  ;;  %v577_v19 = vmul.f32 %v1150_v16, %v521_v38  ;;  %1159 = vrcp.f32 %v556_v15 }
 0x11a   : > { %v576_v20 = vmul.f32 %v1152_v18, %v520_v39  ;;  %1040 = vmatprep.mubr.msk.f32.mxu1 %vm599_vm1, %v589_v17 }
 0x11b   : > { %v592_v21 = vmul.f32 %v953_v8, %v577_v19  ;;  %1041 = vmatmul.mubr.msk.f32.vlgmr.msra.gmra.mrb[0].mxu1 %vm599_vm1, %v590_v14 }
 0x11c   : > { %v1154_v22 = vpop.eup %1153  ;;  %v591_v23 = vmul.f32 %v953_v8, %v576_v20 }
 0x11d   : > { %v1156_v24 = vpop.eup %1155  ;;  %v579_v25 = vmul.f32 %v1154_v22, %v523_v46 }
 0x11e   : > { %v578_v26 = vmul.f32 %v1156_v24, %v522_v47  ;;  %1043 = vmatprep.mubr.msk.f32.mxu1 %vm599_vm1, %v591_v23 }
 0x11f   : > { %v594_v27 = vmul.f32 %v953_v8, %v579_v25  ;;  %1044 = vmatmul.mubr.msk.f32.gmra.mrb[2].mxu1 %vm599_vm1, %v592_v21 }
 0x120   : > { %v1158_v28 = vpop.eup %1157  ;;  %v593_v29 = vmul.f32 %v953_v8, %v578_v26 }
 0x121   : > { %v581_v30 = vmul.f32 %v1158_v28, %v525_v54 }
 0x122   : > { %1046 = vmatprep.mubr.msk.f32.mxu1 %vm599_vm1, %v593_v29 }
 0x123   : > { %v1160_v31 = vpop.eup %1159  ;;  %v596_v32 = vmul.f32 %v953_v8, %v581_v30  ;;  %1047 = vmatmul.mubr.msk.f32.gmra.mrb[4].mxu1 %vm599_vm1, %v594_v27 }
 0x124   : > { %v580_v33 = vmul.f32 %v1160_v31, %v524_v55 }
 0x126   : > { %v595_v34 = vmul.f32 %v953_v8, %v580_v33 }
 0x128   : > { %1049 = vmatprep.mubr.msk.f32.mxu1 %vm599_vm1, %v595_v34 }
 0x129   : > { %1050 = vmatmul.mubr.msk.f32.gmra.mrb[6].mxu1 %vm599_vm1, %v596_v32 }
 0x1ee   : > { %v1042_v36 = vpop.f32.mrb[0].mxu1 }
 0x1ef   : > { %v737_v38 = vmul.f32 %v1042_v36, %v962_v35  ;;  %v690_v39 = vpop.f32.mrb[1].mxu1 }
 0x1f0   : > { %v736_v40 = vmul.f32 %v962_v35, %v690_v39 }
 0x1f1   : > { %v752_v41 = vadd.f32 %v963_v37, %v737_v38 }
 0x1f2   : > { %v751_v42 = vadd.f32 %v963_v37, %v736_v40  ;;  %v1045_v43 = vpop.f32.mrb[2].mxu1 }
 0x1f3   : > { %v965_v44 = vmul.f32 -1.442695, %v752_v41  ;;  %v739_v45 = vmul.f32 %v1045_v43, %v962_v35  ;;  %v700_v46 = vpop.f32.mrb[3].mxu1 }
 0x1f4   : > { %v964_v47 = vmul.f32 -1.442695, %v751_v42  ;;  %v738_v48 = vmul.f32 %v962_v35, %v700_v46 }
 0x1f5   : > { %1161 = vpow2.f32 %v965_v44  ;;  %v754_v49 = vadd.f32 %v963_v37, %v739_v45 }
 0x1f6   : > { %1163 = vpow2.f32 %v964_v47  ;;  %v753_v50 = vadd.f32 %v963_v37, %v738_v48  ;;  %v1048_v51 = vpop.f32.mrb[4].mxu1 }
 0x1f7   : > { %v967_v52 = vmul.f32 -1.442695, %v754_v49  ;;  %v741_v53 = vmul.f32 %v1048_v51, %v962_v35  ;;  %v710_v54 = vpop.f32.mrb[5].mxu1 }
 0x1f8   : > { %v966_v55 = vmul.f32 -1.442695, %v753_v50  ;;  %v740_v56 = vmul.f32 %v962_v35, %v710_v54 }
 0x1f9   : > { %1165 = vpow2.f32 %v967_v52  ;;  %v756_v57 = vadd.f32 %v963_v37, %v741_v53 }
 0x1fa   : > { %1167 = vpow2.f32 %v966_v55  ;;  %v755_v58 = vadd.f32 %v963_v37, %v740_v56 }
 0x1fb   : > { %v969_v59 = vmul.f32 -1.442695, %v756_v57 }
 0x1fc   : > { %v968_v60 = vmul.f32 -1.442695, %v755_v58  ;;  %v1051_v61 = vpop.f32.mrb[6].mxu1 }
 0x1fd   : > { %1169 = vpow2.f32 %v969_v59  ;;  %v743_v62 = vmul.f32 %v1051_v61, %v962_v35  ;;  %v720_v63 = vpop.f32.mrb[7].mxu1 }
 0x1fe   : > { %1171 = vpow2.f32 %v968_v60  ;;  %v742_v0 = vmul.f32 %v962_v35, %v720_v63 }
 0x1ff   : > { %v1162_v1 = vpop.eup %1161  ;;  %v758_v2 = vadd.f32 %v963_v37, %v743_v62 }
 0x200   : > { %v1164_v3 = vpop.eup %1163  ;;  %v784_v4 = vadd.f32 1.0, %v1162_v1  ;;  %v757_v5 = vadd.f32 %v963_v37, %v742_v0 }
 0x201   : > { %v783_v6 = vadd.f32 1.0, %v1164_v3  ;;  %v971_v7 = vmul.f32 -1.442695, %v758_v2 }
 0x202   : > { %1173 = vrcp.f32 %v784_v4  ;;  %v970_v8 = vmul.f32 -1.442695, %v757_v5 }
 0x203   : > { %v1166_v9 = vpop.eup %1165  ;;  %1175 = vrcp.f32 %v783_v6 }
 0x204   : > { %v1168_v10 = vpop.eup %1167  ;;  %v786_v11 = vadd.f32 1.0, %v1166_v9  ;;  %1177 = vpow2.f32 %v971_v7 }
 0x205   : > { %v785_v12 = vadd.f32 1.0, %v1168_v10  ;;  %1179 = vpow2.f32 %v970_v8 }
 0x206   : > { %1181 = vrcp.f32 %v786_v11 }
 0x207   : > { %v1170_v13 = vpop.eup %1169  ;;  %1183 = vrcp.f32 %v785_v12 }
 0x208   : > { %v1172_v14 = vpop.eup %1171  ;;  %v788_v15 = vadd.f32 1.0, %v1170_v13 }
 0x209   : > { %v787_v16 = vadd.f32 1.0, %v1172_v14 }
 0x20a   : > { %1185 = vrcp.f32 %v788_v15 }
 0x20b   : > { %1187 = vrcp.f32 %v787_v16 }
 0x20c   : > { %v1174_v17 = vpop.eup %1173 }
 0x20d   : > { %v1176_v18 = vpop.eup %1175  ;;  %v808_v19 = vmul.f32 %v1174_v17, %v752_v41 }
 0x20e   : > { %v1178_v20 = vpop.eup %1177  ;;  %v807_v21 = vmul.f32 %v1176_v18, %v751_v42 }
 0x20f   : > { %v1180_v22 = vpop.eup %1179  ;;  %816 = vst.msk [vmem:[%s334_s25 + $0x8] sm:$0xff] %vm599_vm1, %v808_v19  ;;  %v790_v23 = vadd.f32 1.0, %v1178_v20 }
 0x210   : > { %v1182_v24 = vpop.eup %1181  ;;  %815 = vst.msk [vmem:[%s334_s25] sm:$0xff] %vm599_vm1, %v807_v21  ;;  %v789_v25 = vadd.f32 1.0, %v1180_v22 }
 0x211   : > { %v1184_v26 = vpop.eup %1183  ;;  %v810_v27 = vmul.f32 %v1182_v24, %v754_v49  ;;  %1189 = vrcp.f32 %v790_v23 }
 0x212   : > { %v809_v28 = vmul.f32 %v1184_v26, %v753_v50  ;;  %1191 = vrcp.f32 %v789_v25 }
 0x213   : > { %818 = vst.msk [vmem:[%s334_s25 + $0x18] sm:$0xff] %vm599_vm1, %v810_v27 }
 0x214   : > { %v1186_v29 = vpop.eup %1185  ;;  %817 = vst.msk [vmem:[%s334_s25 + $0x10] sm:$0xff] %vm599_vm1, %v809_v28 }
 0x215   : > { %v1188_v30 = vpop.eup %1187  ;;  %v812_v31 = vmul.f32 %v1186_v29, %v756_v57 }
 0x216   : > { %v811_v32 = vmul.f32 %v1188_v30, %v755_v58 }
 0x217   : > { %820 = vst.msk [vmem:[%s334_s25 + $0x28] sm:$0xff] %vm599_vm1, %v812_v31 }
 0x218   : > { %819 = vst.msk [vmem:[%s334_s25 + $0x20] sm:$0xff] %vm599_vm1, %v811_v32 }
 0x21b   : > { %v1190_v33 = vpop.eup %1189 }
 0x21c   : > { %v1192_v34 = vpop.eup %1191  ;;  %v814_v35 = vmul.f32 %v1190_v33, %v758_v2 }
 0x21d   : > { %v813_v36 = vmul.f32 %v1192_v34, %v757_v5 }
 0x21e   : > { %822 = vst.msk [vmem:[%s334_s25 + $0x38] sm:$0xff] %vm599_vm1, %v814_v35 }
 0x21f   : > { %821 = vst.msk [vmem:[%s334_s25 + $0x30] sm:$0xff] %vm599_vm1, %v813_v36 }
 0x220   : > { %1206 = shalt.err (!%p1203_p5)
}
 0x221   : > { %s1207_s22 = scalar_lea.hbm %s1462_s14, 1024  ;;  %s1211_s26 = scalar_lea.hbm %s1524_s8, 2048 }
 0x222   : > { %p1208_p6 = scmp.ne.s32.totalorder %s1462_s14, %s1207_s22  ;;  %p1212_p10 = scmp.lt.u32.totalorder %s1462_s14, %s1524_s8 }
 0x223   : > { %p1213_p11 = scmp.lt.u32.totalorder %s1211_s26, %s1207_s22  ;;  %p1215_p13 = scmp.lt.u32.totalorder %s1207_s22, %s1462_s14 }
 0x224   : > { %p1209_p7 = pnand %p1208_p6, %p1361_p4 }
 0x225   : > { %p1214_p12 = por %p1213_p11, %p1212_p10 }
 0x226   : > { %p1210_p9 = pneg %p1209_p7 }
 0x227   : > { %p1216_p0 = por %p1215_p13, %p1214_p12 }
 0x229   : > { %p1217_p1 = pnand %p1216_p0, %p1210_p9 }
 0x22b   : > { %1220 = shalt.err (!%p1217_p1)
}
 0x22c   : > { %s1274_s19 = smov 128   ;;  %s1275_s16 = smov 8  }
 0x22d   : > { %1072 = dma.vmem_to_hbm [thread:$0]  (%p1361_p4), %s1464_s23, 1024, %s1462_s14, %s1470_s30, %s1274_s19, %s1274_s19, %s1275_s16  }
 0x22e PF: > { %p1078_p2 = scmp.ge.s32.totalorder %s1271_s10, 2  ;;  %s854_s20 = sand.u32 1, %s1251_s27  }
 0x22f   : > { %s855_s21 = scalar_lea.sflag [#allocation3], %s854_s20 }
 0x230   : > { %p1075_p3 = pnand %p1078_p2, %p1368_p8 }
 0x232   : > { %1246 = dma.done.wait (!%p1075_p3), %s855_s21, 1024  }
 0x233   : > { %1248 = vsyncadd (!%p1075_p3), %s855_s21, 4294966272  ;;  %s21_s10 = sadd.s32 1, %s1271_s10   ;;  %s1527_s27 = smov %s1255_s28 }
 0x234   : > { %p18_p5 = scmp.ge.s32.totalorder %s21_s10, 4   ;;  %s1528_s28 = smov %s1259_s29 }
 0x235   : > { %s1529_s29 = smov %s1374_s18  ;;  %s1530_s30 = smov %s1267_s9 }
 0x236   : > { %s1531_s9 = smov %s1533_s13  ;;  %20 = sbr.rel (!%p18_p5) target bundleno = 4 (0x4), region = 90 }
 0x23d   :  { %860 = vsyncpa [#allocation3], 1 }
 0x23e   :  { %862 = vsyncpa [#allocation3 + $0x1], 1 }

</bundles_post_ra>
